<compile_context>
chip_gen: v6e
topology: v6e:2x2x1
jax: 0.10.0
libtpu: 0.0.40
codegen_flags: <defaults>
</compile_context>

<pallas_src>
import functools
import math

import jax
import jax.numpy as jnp
from jax.experimental import pallas as pl
from jax.experimental.pallas import tpu as pltpu

HIDDEN = 100          # logical hidden size, fixed by the module (nn.Linear(state_dim, 100))
HIDDEN_PAD = 128      # hidden padded to a full lane width
LANE = 128
LN_EPS = 1e-5         # PyTorch nn.LayerNorm default eps
_NEG_INF = -1e30


def _round_up(n, m):
    return ((n + m - 1) // m) * m


def actor_kernel(x_ref, w1_ref, b1_ref, w2_ref, b2_ref, gamma_ref, beta_ref,
                 out_ref, *, action_dim):
    # fc1: [TB, S] @ [S, 128] + [1, 128]   (padded hidden cols of w1/b1 are 0)
    x = x_ref[...]
    h = jnp.dot(x, w1_ref[...], preferred_element_type=jnp.float32) + b1_ref[...]
    h = jnp.maximum(h, 0.0)                       # ReLU (padded lanes stay 0)

    # LayerNorm over the *logical* 100 features. Padded lanes hold zeros, so
    # the raw sum over 128 lanes equals the sum over the first 100; divide by
    # 100, and mask the padded lanes out of the centered/variance terms.
    inv_n = 1.0 / float(HIDDEN)
    lane = jax.lax.broadcasted_iota(jnp.int32, h.shape, 1)
    valid = lane < HIDDEN
    mean = jnp.sum(h, axis=-1, keepdims=True) * inv_n
    cen = jnp.where(valid, h - mean, 0.0)
    var = jnp.sum(cen * cen, axis=-1, keepdims=True) * inv_n
    hn = cen * jax.lax.rsqrt(var + LN_EPS)
    hn = hn * gamma_ref[...] + beta_ref[...]      # padded gamma/beta are 0

    # fc2: [TB, 128] @ [128, A_pad] + [1, A_pad]  (padded rows of w2 are 0)
    logits = jnp.dot(hn, w2_ref[...], preferred_element_type=jnp.float32) + b2_ref[...]

    # Mask padded action lanes so the softmax ignores them.
    col = jax.lax.broadcasted_iota(jnp.int32, logits.shape, 1)
    logits = jnp.where(col < action_dim, logits, _NEG_INF)

    # Numerically stable softmax; reciprocal keeps the divide off the VALU.
    m = jnp.max(logits, axis=-1, keepdims=True)
    e = jnp.exp(logits - m)
    denom = jnp.sum(e, axis=-1, keepdims=True)
    out_ref[...] = e * pl.reciprocal(denom, approx=False)


def actor_forward(x, params, *, tile_b=256):
    """x: [B, state_dim] float32 -> action probabilities [B, action_dim]."""
    w1, b1 = params["w1"], params["b1"]             # [S, 128], [1, 128]
    w2, b2 = params["w2"], params["b2"]             # [128, A_pad], [1, A_pad]
    gamma, beta = params["ln_gamma"], params["ln_beta"]
    action_dim = params["action_dim"]               # logical A (python int)

    B, S = x.shape
    A_pad = w2.shape[1]

    # Batch tiling: small batches run as one block (rounded up to a sublane
    # multiple); large batches get pipelined 256-row tiles.
    if B <= tile_b:
        tb = _round_up(max(B, 1), 8)
    else:
        tb = tile_b
    B_pad = _round_up(B, tb)
    if B_pad != B:
        x = jnp.pad(x, ((0, B_pad - B), (0, 0)))

    grid = (B_pad // tb,)
    const = lambda i: (0, 0)    # weights: same block every step -> stay resident

    out = pl.pallas_call(
        functools.partial(actor_kernel, action_dim=action_dim),
        out_shape=jax.ShapeDtypeStruct((B_pad, A_pad), jnp.float32),
        grid=grid,
        in_specs=[
            pl.BlockSpec((tb, S), lambda i: (i, 0)),
            pl.BlockSpec(w1.shape, const),
            pl.BlockSpec(b1.shape, const),
            pl.BlockSpec(w2.shape, const),
            pl.BlockSpec(b2.shape, const),
            pl.BlockSpec(gamma.shape, const),
            pl.BlockSpec(beta.shape, const),
        ],
        out_specs=pl.BlockSpec((tb, A_pad), lambda i: (i, 0)),
        compiler_params=pltpu.CompilerParams(
            dimension_semantics=("parallel",)),
    )(x, w1, b1, w2, b2, gamma, beta)
    return out[:B, :action_dim]


def init_actor_params(key, state_dim, action_dim):
    """Deterministic synthetic init (uniform(-1/sqrt(fan_in), 1/sqrt(fan_in)),
    matching the scale of PyTorch's default Linear init). Parameters are stored
    pre-padded to TPU-friendly shapes: hidden -> 128, action -> multiple of 128.
    Weights are [in, out] (PyTorch stores [out, in]); padded regions are zero."""
    k1, k2, k3, k4 = jax.random.split(key, 4)
    bound1 = 1.0 / math.sqrt(state_dim)
    bound2 = 1.0 / math.sqrt(HIDDEN)
    a_pad = _round_up(action_dim, LANE)

    w1 = jax.random.uniform(k1, (state_dim, HIDDEN), jnp.float32, -bound1, bound1)
    b1 = jax.random.uniform(k2, (1, HIDDEN), jnp.float32, -bound1, bound1)
    w2 = jax.random.uniform(k3, (HIDDEN, action_dim), jnp.float32, -bound2, bound2)
    b2 = jax.random.uniform(k4, (1, action_dim), jnp.float32, -bound2, bound2)
    gamma = jnp.ones((1, HIDDEN), jnp.float32)
    beta = jnp.zeros((1, HIDDEN), jnp.float32)

    dh = HIDDEN_PAD - HIDDEN
    da = a_pad - action_dim
    return {
        "w1": jnp.pad(w1, ((0, 0), (0, dh))),
        "b1": jnp.pad(b1, ((0, 0), (0, dh))),
        "w2": jnp.pad(w2, ((0, dh), (0, da))),
        "b2": jnp.pad(b2, ((0, 0), (0, da))),
        "ln_gamma": jnp.pad(gamma, ((0, 0), (0, dh))),
        "ln_beta": jnp.pad(beta, ((0, 0), (0, dh))),
        "action_dim": action_dim,
    }


def actor_reference(x, params):
    """Pure-JAX reference (on the logical, un-padded parameters)."""
    A = params["action_dim"]
    w1 = params["w1"][:, :HIDDEN]
    b1 = params["b1"][:, :HIDDEN]
    w2 = params["w2"][:HIDDEN, :A]
    b2 = params["b2"][:, :A]
    gamma = params["ln_gamma"][:, :HIDDEN]
    beta = params["ln_beta"][:, :HIDDEN]

    h = x @ w1 + b1
    h = jnp.maximum(h, 0.0)
    mean = jnp.mean(h, axis=-1, keepdims=True)
    var = jnp.mean((h - mean) ** 2, axis=-1, keepdims=True)
    hn = (h - mean) / jnp.sqrt(var + LN_EPS)
    hn = hn * gamma + beta
    logits = hn @ w2 + b2
    return jax.nn.softmax(logits, axis=-1)


if __name__ == "__main__":
    key = jax.random.PRNGKey(0)
    k_param, k_x = jax.random.split(key)

    batch = 8
    state_dim = 32
    action_dim = 6

    params = init_actor_params(k_param, state_dim, action_dim)
    x = jax.random.normal(k_x, (batch, state_dim), jnp.float32)

    out = actor_forward(x, params)
    out = jax.block_until_ready(out)

    ref = actor_reference(x, params)
    assert out.shape == (batch, action_dim)
    # probabilities sum to 1 per row
    assert jnp.allclose(jnp.sum(out, axis=-1), 1.0, atol=1e-5)
    assert jnp.allclose(out, ref, atol=1e-5, rtol=1e-5)

    print("KERNEL_OK")
</pallas_src>

<mosaic_0001>
module attributes {stable_mosaic.version = 11 : i64} {
  func.func @actor_kernel(%arg0: i32, %arg1: memref<8x32xf32, #tpu.memory_space<vmem>>, %arg2: memref<32x128xf32, #tpu.memory_space<vmem>>, %arg3: memref<1x128xf32, #tpu.memory_space<vmem>>, %arg4: memref<128x128xf32, #tpu.memory_space<vmem>>, %arg5: memref<1x128xf32, #tpu.memory_space<vmem>>, %arg6: memref<1x128xf32, #tpu.memory_space<vmem>>, %arg7: memref<1x128xf32, #tpu.memory_space<vmem>>, %arg8: memref<8x128xf32, #tpu.memory_space<vmem>>) attributes {dimension_semantics = [#tpu.dimension_semantics<parallel>], iteration_bounds = array<i64: 1>, scalar_prefetch = 0 : i64, scratch_operands = 0 : i64, tpu.core_type = #tpu.core_type<tc>, window_params = [{transform_indices = @transform_0, window_bounds = array<i64: 8, 32>}, {pipeline_mode = #tpu.pipeline_mode<synchronous>, transform_indices = @transform_1, window_bounds = array<i64: 32, 128>}, {pipeline_mode = #tpu.pipeline_mode<synchronous>, transform_indices = @transform_2, window_bounds = array<i64: 1, 128>}, {pipeline_mode = #tpu.pipeline_mode<synchronous>, transform_indices = @transform_3, window_bounds = array<i64: 128, 128>}, {pipeline_mode = #tpu.pipeline_mode<synchronous>, transform_indices = @transform_4, window_bounds = array<i64: 1, 128>}, {pipeline_mode = #tpu.pipeline_mode<synchronous>, transform_indices = @transform_5, window_bounds = array<i64: 1, 128>}, {pipeline_mode = #tpu.pipeline_mode<synchronous>, transform_indices = @transform_6, window_bounds = array<i64: 1, 128>}, {transform_indices = @transform_7, window_bounds = array<i64: 8, 128>}]} {
    %c0 = arith.constant 0 : index
    %c0_0 = arith.constant 0 : index
    %0 = vector.load %arg1[%c0, %c0_0] : memref<8x32xf32, #tpu.memory_space<vmem>>, vector<8x32xf32>
    %c0_1 = arith.constant 0 : index
    %c0_2 = arith.constant 0 : index
    %1 = vector.load %arg2[%c0_1, %c0_2] : memref<32x128xf32, #tpu.memory_space<vmem>>, vector<32x128xf32>
    %cst = arith.constant dense<0.000000e+00> : vector<8x128xf32>
    %2 = tpu.matmul %0, %1, %cst {dimension_numbers = #tpu.dot_dimension_numbers<[1], [0], [0], [1], [0, 0, 1, 1], [], []>} : vector<8x32xf32>, vector<32x128xf32>, vector<8x128xf32> -> vector<8x128xf32>
    %c0_3 = arith.constant 0 : index
    %c0_4 = arith.constant 0 : index
    %3 = vector.load %arg3[%c0_3, %c0_4] : memref<1x128xf32, #tpu.memory_space<vmem>>, vector<1x128xf32>
    %4 = vector.broadcast %3 : vector<1x128xf32> to vector<8x128xf32>
    %5 = arith.addf %2, %4 : vector<8x128xf32>
    %cst_5 = arith.constant 0.000000e+00 : f32
    %6 = vector.broadcast %cst_5 : f32 to vector<8x128xf32>
    %7 = arith.maximumf %5, %6 : vector<8x128xf32>
    %8 = tpu.iota {dimensions = array<i32: 1>} : vector<8x128xi32>
    %c100_i32 = arith.constant 100 : i32
    %9 = vector.broadcast %c100_i32 : i32 to vector<8x128xi32>
    %10 = arith.cmpi slt, %8, %9 : vector<8x128xi32>
    %cst_6 = arith.constant dense<0.000000e+00> : vector<8xf32>
    %11 = vector.multi_reduction <add>, %7, %cst_6 [1] : vector<8x128xf32> to vector<8xf32>
    %12 = vector.shape_cast %11 : vector<8xf32> to vector<8x1xf32>
    %cst_7 = arith.constant 0.00999999977 : f32
    %13 = vector.broadcast %cst_7 : f32 to vector<8x1xf32>
    %14 = arith.mulf %12, %13 : vector<8x1xf32>
    %15 = vector.broadcast %14 : vector<8x1xf32> to vector<8x128xf32>
    %16 = arith.subf %7, %15 : vector<8x128xf32>
    %cst_8 = arith.constant 0.000000e+00 : f32
    %17 = vector.broadcast %cst_8 : f32 to vector<8x128xf32>
    %18 = arith.select %10, %16, %17 : vector<8x128xi1>, vector<8x128xf32>
    %19 = arith.mulf %18, %18 : vector<8x128xf32>
    %cst_9 = arith.constant dense<0.000000e+00> : vector<8xf32>
    %20 = vector.multi_reduction <add>, %19, %cst_9 [1] : vector<8x128xf32> to vector<8xf32>
    %21 = vector.shape_cast %20 : vector<8xf32> to vector<8x1xf32>
    %cst_10 = arith.constant 0.00999999977 : f32
    %22 = vector.broadcast %cst_10 : f32 to vector<8x1xf32>
    %23 = arith.mulf %21, %22 : vector<8x1xf32>
    %cst_11 = arith.constant 9.99999974E-6 : f32
    %24 = vector.broadcast %cst_11 : f32 to vector<8x1xf32>
    %25 = arith.addf %23, %24 : vector<8x1xf32>
    %26 = math.rsqrt %25 : vector<8x1xf32>
    %27 = vector.broadcast %26 : vector<8x1xf32> to vector<8x128xf32>
    %28 = arith.mulf %18, %27 : vector<8x128xf32>
    %c0_12 = arith.constant 0 : index
    %c0_13 = arith.constant 0 : index
    %29 = vector.load %arg6[%c0_12, %c0_13] : memref<1x128xf32, #tpu.memory_space<vmem>>, vector<1x128xf32>
    %30 = vector.broadcast %29 : vector<1x128xf32> to vector<8x128xf32>
    %31 = arith.mulf %28, %30 : vector<8x128xf32>
    %c0_14 = arith.constant 0 : index
    %c0_15 = arith.constant 0 : index
    %32 = vector.load %arg7[%c0_14, %c0_15] : memref<1x128xf32, #tpu.memory_space<vmem>>, vector<1x128xf32>
    %33 = vector.broadcast %32 : vector<1x128xf32> to vector<8x128xf32>
    %34 = arith.addf %31, %33 : vector<8x128xf32>
    %c0_16 = arith.constant 0 : index
    %c0_17 = arith.constant 0 : index
    %35 = vector.load %arg4[%c0_16, %c0_17] : memref<128x128xf32, #tpu.memory_space<vmem>>, vector<128x128xf32>
    %cst_18 = arith.constant dense<0.000000e+00> : vector<8x128xf32>
    %36 = tpu.matmul %34, %35, %cst_18 {dimension_numbers = #tpu.dot_dimension_numbers<[1], [0], [0], [1], [0, 0, 1, 1], [], []>} : vector<8x128xf32>, vector<128x128xf32>, vector<8x128xf32> -> vector<8x128xf32>
    %c0_19 = arith.constant 0 : index
    %c0_20 = arith.constant 0 : index
    %37 = vector.load %arg5[%c0_19, %c0_20] : memref<1x128xf32, #tpu.memory_space<vmem>>, vector<1x128xf32>
    %38 = vector.broadcast %37 : vector<1x128xf32> to vector<8x128xf32>
    %39 = arith.addf %36, %38 : vector<8x128xf32>
    %40 = tpu.iota {dimensions = array<i32: 1>} : vector<8x128xi32>
    %c6_i32 = arith.constant 6 : i32
    %41 = vector.broadcast %c6_i32 : i32 to vector<8x128xi32>
    %42 = arith.cmpi slt, %40, %41 : vector<8x128xi32>
    %cst_21 = arith.constant -1.000000e+30 : f32
    %43 = vector.broadcast %cst_21 : f32 to vector<8x128xf32>
    %44 = arith.select %42, %39, %43 : vector<8x128xi1>, vector<8x128xf32>
    %cst_22 = arith.constant dense<0xFF800000> : vector<8xf32>
    %45 = vector.multi_reduction <maximumf>, %44, %cst_22 [1] : vector<8x128xf32> to vector<8xf32>
    %46 = vector.shape_cast %45 : vector<8xf32> to vector<8x1xf32>
    %47 = vector.broadcast %46 : vector<8x1xf32> to vector<8x128xf32>
    %48 = arith.subf %44, %47 : vector<8x128xf32>
    %49 = math.exp %48 : vector<8x128xf32>
    %cst_23 = arith.constant dense<0.000000e+00> : vector<8xf32>
    %50 = vector.multi_reduction <add>, %49, %cst_23 [1] : vector<8x128xf32> to vector<8xf32>
    %51 = vector.shape_cast %50 : vector<8xf32> to vector<8x1xf32>
    %52 = tpu.reciprocal %51 : vector<8x1xf32> -> vector<8x1xf32>
    %53 = vector.broadcast %52 : vector<8x1xf32> to vector<8x128xf32>
    %54 = arith.mulf %49, %53 : vector<8x128xf32>
    %c0_24 = arith.constant 0 : index
    %c0_25 = arith.constant 0 : index
    %55 = vector.load %arg8[%c0_24, %c0_25] : memref<8x128xf32, #tpu.memory_space<vmem>>, vector<8x128xf32>
    tpu.vector_store %arg8[%c0_24, %c0_25], %54 {strides = array<i32>} : memref<8x128xf32, #tpu.memory_space<vmem>>, vector<8x128xf32>,
    return
  }
  func.func @transform_0(%arg0: i32) -> (i32, i32) {
    %c0_i32 = arith.constant 0 : i32
    %c0_i32_0 = arith.constant 0 : i32
    return %arg0, %c0_i32 : i32, i32
  }
  func.func @transform_1(%arg0: i32) -> (i32, i32) {
    %c0_i32 = arith.constant 0 : i32
    %c0_i32_0 = arith.constant 0 : i32
    %c0_i32_1 = arith.constant 0 : i32
    return %c0_i32, %c0_i32_0 : i32, i32
  }
  func.func @transform_2(%arg0: i32) -> (i32, i32) {
    %c0_i32 = arith.constant 0 : i32
    %c0_i32_0 = arith.constant 0 : i32
    %c0_i32_1 = arith.constant 0 : i32
    return %c0_i32, %c0_i32_0 : i32, i32
  }
  func.func @transform_3(%arg0: i32) -> (i32, i32) {
    %c0_i32 = arith.constant 0 : i32
    %c0_i32_0 = arith.constant 0 : i32
    %c0_i32_1 = arith.constant 0 : i32
    return %c0_i32, %c0_i32_0 : i32, i32
  }
  func.func @transform_4(%arg0: i32) -> (i32, i32) {
    %c0_i32 = arith.constant 0 : i32
    %c0_i32_0 = arith.constant 0 : i32
    %c0_i32_1 = arith.constant 0 : i32
    return %c0_i32, %c0_i32_0 : i32, i32
  }
  func.func @transform_5(%arg0: i32) -> (i32, i32) {
    %c0_i32 = arith.constant 0 : i32
    %c0_i32_0 = arith.constant 0 : i32
    %c0_i32_1 = arith.constant 0 : i32
    return %c0_i32, %c0_i32_0 : i32, i32
  }
  func.func @transform_6(%arg0: i32) -> (i32, i32) {
    %c0_i32 = arith.constant 0 : i32
    %c0_i32_0 = arith.constant 0 : i32
    %c0_i32_1 = arith.constant 0 : i32
    return %c0_i32, %c0_i32_0 : i32, i32
  }
  func.func @transform_7(%arg0: i32) -> (i32, i32) {
    %c0_i32 = arith.constant 0 : i32
    %c0_i32_0 = arith.constant 0 : i32
    return %arg0, %c0_i32 : i32, i32
  }
}

</mosaic_0001>

<bundles_post_ra>
// kernel: tpu_custom_call.1
= control target key start
LH: loop header
LB: loop body
LE: loop exit
PB: predicated region body
PF: predicated region fallthrough
CT: control target
= control target key end

     0   :  { %12 = vsyncpa [#allocation3], 0  ;;  %s572_s0 = inlined_call_operand.hbm [shape: f32[8,32], index: 0, kind: input, shape index: {}]   ;;  %s573_s1 = inlined_call_operand.hbm [shape: f32[32,128], index: 1, kind: input, shape index: {}]   ;;  %s574_s2 = inlined_call_operand.vmem [shape: f32[1,128], index: 2, kind: input, shape index: {}]   ;;  %s575_s3 = inlined_call_operand.hbm [shape: f32[128,128], index: 3, kind: input, shape index: {}]   ;;  %s576_s4 = inlined_call_operand.vmem [shape: f32[1,128], index: 4, kind: input, shape index: {}]   ;;  %s577_s5 = inlined_call_operand.vmem [shape: f32[1,128], index: 5, kind: input, shape index: {}]   ;;  %s578_s6 = inlined_call_operand.vmem [shape: f32[1,128], index: 6, kind: input, shape index: {}]   ;;  %s579_s7 = inlined_call_operand.hbm [shape: f32[8,128], index: 7, kind: output, shape index: {}]  }
   0x1   :  { %13 = vsyncpa [#allocation6], 0 }
   0x2   :  { %14 = vsyncpa [#allocation4], 0  ;;  %s478_s24 = smov [#allocation5]  }
   0x3   :  { %s30_s25 = sshll.u32 %s478_s24, 4  ;;  %s31_s25 = int_to_ptr.vmem [resolvable:$true] %s30_s25 }
   0x4   :  { %s400_s26 = scalar_lea.vmem %s31_s25, 512  ;;  %p405_p1 = scmp.lt.s32.totalorder %s31_s25, %s31_s25 }
   0x5   :  { %p401_p0 = scmp.ne.s32.totalorder %s31_s25, %s400_s26  ;;  %p406_p2 = scmp.lt.s32.totalorder %s400_s26, %s400_s26 }
   0x7   :  { %p407_p3 = por %p406_p2, %p405_p1 }
   0x9   :  { %p408_p4 = pnand %p407_p3, %p401_p0 }
   0xb   :  { %411 = shalt.err (!%p408_p4)
}
   0xc   :  { %s479_s27 = smov 128   ;;  %s480_s28 = smov 8  }
   0xd   :  { %36 = dma.hbm_to_vmem [thread:$0]  %s573_s1, 512, %s31_s25, [#allocation6], %s479_s27, %s479_s27, %s480_s28  }
   0xe   :  { %s481_s8 = smov [#allocation2]   ;;  %s482_s10 = smov [#allocation7]  }
   0xf   :  { %s21_s9 = sshll.u32 %s481_s8, 4  ;;  %s44_s11 = sshll.u32 %s482_s10, 4  ;;  %s22_s9 = int_to_ptr.vmem [resolvable:$true] %s21_s9  ;;  %s45_s11 = int_to_ptr.vmem [resolvable:$true] %s44_s11 }
  0x10   :  { %s420_s12 = scalar_lea.vmem %s22_s9, 128  ;;  %p425_p6 = scmp.lt.s32.totalorder %s22_s9, %s22_s9 }
  0x11   :  { %p421_p5 = scmp.ne.s32.totalorder %s22_s9, %s420_s12  ;;  %p426_p7 = scmp.lt.s32.totalorder %s420_s12, %s420_s12 }
  0x13   :  { %p427_p8 = por %p426_p7, %p425_p6 }
  0x15   :  { %p428_p9 = pnand %p427_p8, %p421_p5 }
  0x17   :  { %431 = shalt.err (!%p428_p9)
}
  0x18   :  { %24 = dma.hbm_to_vmem [thread:$0]  %s572_s0, 128, %s22_s9, [#allocation3]  }
  0x19   :  { %s440_s15 = scalar_lea.vmem %s45_s11, 2048  ;;  %p445_p11 = scmp.lt.s32.totalorder %s45_s11, %s45_s11 }
  0x1a   :  { %p441_p10 = scmp.ne.s32.totalorder %s45_s11, %s440_s15  ;;  %p446_p12 = scmp.lt.s32.totalorder %s440_s15, %s440_s15 }
  0x1c   :  { %p447_p13 = por %p446_p12, %p445_p11 }
  0x1e   :  { %p448_p0 = pnand %p447_p13, %p441_p10 }
  0x20   :  { %451 = shalt.err (!%p448_p0)
}
  0x21   :  { %50 = dma.hbm_to_vmem [thread:$0]  %s575_s3, 2048, %s45_s11, [#allocation6], %s479_s27, %s479_s27, %s480_s28  }
  0x22   :  { %472 = dma.done.wait [#allocation3], 128  }
  0x23   :  { %473 = vsyncadd [#allocation3], 4294967168 }
  0x24   :  { %474 = dma.done.wait [#allocation6], 2560  }
  0x25   :  { %475 = vsyncadd [#allocation6], 4294964736  ;;  %v483_v0 = vmov 0.0   ;;  %vm484_vm0 = vmmov 0   ;;  %v70_v1 = vld [vmem:[#allocation5 + $0x18] sm:$0xff]  ;;  %v69_v2 = vld [vmem:[#allocation5 + $0x10] sm:$0xff]  ;;  %v153_v15 = vlaneseq }
  0x26   :  { %332 = vmatprep.subr.mxu0 %v483_v0  ;;  %340 = vmatprep.mubr.msk.f32.mxu0 %vm484_vm0, %v483_v0  ;;  %v68_v3 = vld [vmem:[#allocation5 + $0x8] sm:$0xff]  ;;  %v67_v4 = vld [vmem:[#allocation5] sm:$0xff]  ;;  %v66_v5 = vld [vmem:[#allocation2] sm:$0xff]  ;;  %vm78_vm1 = vcmask 261120  }
  0x27   :  { %343 = vmatprep.subr.mxu1 %v483_v0  ;;  %375 = vmatprep.mubr.msk.f32.mxu1 %vm484_vm0, %v483_v0  ;;  %v305_v6 = vld [vmem:[%s574_s2] ss:$0 sm:$0xff]  ;;  %v198_v12 = vld [vmem:[#allocation7 + $0x70] sm:$0xff]  ;;  %v197_v13 = vld [vmem:[#allocation7 + $0x68] sm:$0xff]  ;;  %v154_v16 = vand.u32 127, %v153_v15 }
  0x28   :  { %333 = vmatpush3.msra.mxu0 %v70_v1  ;;  %v199_v11 = vld [vmem:[#allocation7 + $0x78] sm:$0xff]  ;;  %v196_v14 = vld [vmem:[#allocation7 + $0x60] sm:$0xff]  ;;  %v194_v23 = vld [vmem:[#allocation7 + $0x50] sm:$0xff] }
  0x29   :  { %334 = vmatprep.subr.mxu0 %v483_v0  ;;  %344 = vmatpush3.msra.mxu1 %v199_v11  ;;  %vm155_vm2 = vcmp.lt.s32.totalorder %v154_v16, 100  ;;  %v195_v22 = vld [vmem:[#allocation7 + $0x58] sm:$0xff]  ;;  %v193_v24 = vld [vmem:[#allocation7 + $0x48] sm:$0xff]  ;;  %v192_v25 = vld [vmem:[#allocation7 + $0x40] sm:$0xff]  ;;  %vm277_vm3 = vcmp.lt.s32.totalorder %v154_v16, 6 }
  0x2a   :  { %335 = vmatpush3.msra.mxu0 %v69_v2  ;;  %345 = vmatprep.subr.mxu1 %v483_v0  ;;  %v191_v26 = vld [vmem:[#allocation7 + $0x38] sm:$0xff]  ;;  %v190_v27 = vld [vmem:[#allocation7 + $0x30] sm:$0xff]  ;;  %v189_v28 = vld [vmem:[#allocation7 + $0x28] sm:$0xff] }
  0x2b   :  { %336 = vmatprep.subr.mxu0 %v483_v0  ;;  %346 = vmatpush3.msra.mxu1 %v198_v12  ;;  %v188_v29 = vld [vmem:[#allocation7 + $0x20] sm:$0xff]  ;;  %v187_v30 = vld [vmem:[#allocation7 + $0x18] sm:$0xff]  ;;  %v186_v31 = vld [vmem:[#allocation7 + $0x10] sm:$0xff] }
  0x2c   :  { %337 = vmatpush3.msra.mxu0 %v68_v3  ;;  %347 = vmatprep.subr.mxu1 %v483_v0  ;;  %v185_v32 = vld [vmem:[#allocation7 + $0x8] sm:$0xff]  ;;  %v184_v33 = vld [vmem:[#allocation7] sm:$0xff]  ;;  %v307_v38 = vld [vmem:[%s577_s5] ss:$0 sm:$0xff]  ;;  %s485_s5 = smov [#allocation8]  }
  0x2d   :  { %338 = vmatprep.subr.mxu0 %v483_v0  ;;  %348 = vmatpush3.msra.mxu1 %v197_v13  ;;  %v308_v40 = vld [vmem:[%s578_s6] ss:$0 sm:$0xff]  ;;  %s295_s6 = sshll.u32 %s485_s5, 4  ;;  %s296_s6 = int_to_ptr.vmem [resolvable:$true] %s295_s6 }
  0x2e   :  { %339 = vmatpush3.msra.mxu0 %v67_v4  ;;  %349 = vmatprep.subr.mxu1 %v483_v0  ;;  %v309_v43 = vld [vmem:[%s576_s4] ss:$0 sm:$0xff]  ;;  %s452_s4 = scalar_lea.vmem %s296_s6, 128  ;;  %p457_p2 = scmp.lt.s32.totalorder %s296_s6, %s296_s6 }
  0x2f   :  { %341 = vmatmul.mubr.msk.f32.vlgmr.msra.gmra.mxu0 %vm78_vm1, %v66_v5  ;;  %350 = vmatpush3.msra.mxu1 %v196_v14  ;;  %p453_p1 = scmp.ne.s32.totalorder %s296_s6, %s452_s4  ;;  %p458_p3 = scmp.lt.s32.totalorder %s452_s4, %s452_s4 }
  0x30   :  { %351 = vmatprep.subr.mxu1 %v483_v0 }
  0x31   :  { %352 = vmatpush3.msra.mxu1 %v195_v22  ;;  %p459_p4 = por %p458_p3, %p457_p2 }
  0x32   :  { %353 = vmatprep.subr.mxu1 %v483_v0 }
  0x33   :  { %354 = vmatpush3.msra.mxu1 %v194_v23  ;;  %p460_p5 = pnand %p459_p4, %p453_p1 }
  0x34   :  { %355 = vmatprep.subr.mxu1 %v483_v0 }
  0x35   :  { %356 = vmatpush3.msra.mxu1 %v193_v24 }
  0x36   :  { %357 = vmatprep.subr.mxu1 %v483_v0 }
  0x37   :  { %358 = vmatpush3.msra.mxu1 %v192_v25 }
  0x38   :  { %359 = vmatprep.subr.mxu1 %v483_v0 }
  0x39   :  { %360 = vmatpush3.msra.mxu1 %v191_v26 }
  0x3a   :  { %361 = vmatprep.subr.mxu1 %v483_v0 }
  0x3b   :  { %362 = vmatpush3.msra.mxu1 %v190_v27 }
  0x3c   :  { %363 = vmatprep.subr.mxu1 %v483_v0 }
  0x3d   :  { %364 = vmatpush3.msra.mxu1 %v189_v28 }
  0x3e   :  { %365 = vmatprep.subr.mxu1 %v483_v0 }
  0x3f   :  { %366 = vmatpush3.msra.mxu1 %v188_v29 }
  0x40   :  { %367 = vmatprep.subr.mxu1 %v483_v0 }
  0x41   :  { %368 = vmatpush3.msra.mxu1 %v187_v30 }
  0x42   :  { %369 = vmatprep.subr.mxu1 %v483_v0 }
  0x43   :  { %370 = vmatpush3.msra.mxu1 %v186_v31 }
  0x44   :  { %371 = vmatprep.subr.mxu1 %v483_v0 }
  0x45   :  { %372 = vmatpush3.msra.mxu1 %v185_v32 }
  0x46   :  { %373 = vmatprep.subr.mxu1 %v483_v0 }
  0x47   :  { %374 = vmatpush3.msra.mxu1 %v184_v33 }
  0xef   :  { %v148_v7 = vpop.f32.mrf.mxu0 }
  0xf0   :  { %v149_v8 = vadd.f32 %v305_v6, %v148_v7 }
  0xf1   :  { %v342_v9 = vpop.f32.mrf.mxu0 }
  0xf2   :  { %v152_v10 = vmax.f32 %v149_v8, 0.0 }
  0xf4   :  { %156 = vadd.xlane.f32.xlu0 %v152_v10 }
 0x17d   :  { %v157_v17 = vpop.xlane.xlu0 %156 }
 0x17e   :  { %v158_v18 = vmul.f32 0.01, %v157_v17 }
 0x180   :  { %v159_v19 = vsub.f32 %v152_v10, %v158_v18 }
 0x182   :  { %v160_v20 = vsel %vm155_vm2, %v159_v19, 0.0 }
 0x183   :  { %v161_v21 = vmul.f32 %v160_v20, %v160_v20 }
 0x185   :  { %162 = vadd.xlane.f32.xlu0 %v161_v21 }
 0x20e   :  { %v163_v34 = vpop.xlane.xlu0 %162 }
 0x20f   :  { %v164_v35 = vmul.f32 0.01, %v163_v34 }
 0x211   :  { %v165_v36 = vadd.f32 1e-05, %v164_v35 }
 0x213   :  { %386 = vrsqrt.f32 %v165_v36 }
 0x220   :  { %v387_v37 = vpop.eup %386 }
 0x221   :  { %v167_v39 = vmul.f32 %v387_v37, %v160_v20 }
 0x223   :  { %v175_v41 = vmul.f32 %v307_v38, %v167_v39 }
 0x225   :  { %v183_v42 = vadd.f32 %v308_v40, %v175_v41 }
 0x227   :  { %376 = vmatmul.mubr.f32.vlgmr.msra.gmra.mxu1 %v183_v42 }
 0x2e7   :  { %v273_v44 = vpop.f32.mrf.mxu1 }
 0x2e8   :  { %v274_v45 = vadd.f32 %v309_v43, %v273_v44 }
 0x2e9   :  { %v377_v46 = vpop.f32.mrf.mxu1 }
 0x2ea   :  { %v278_v47 = vsel %vm277_vm3, %v274_v45, -1e+30 }
 0x2eb   :  { %279 = vmax.xlane.f32.xlu1 %v278_v47 }
 0x374   :  { %v280_v48 = vpop.xlane.xlu1 %279 }
 0x375   :  { %v281_v49 = vsub.f32 %v278_v47, %v280_v48 }
 0x377   :  { %v282_v50 = vmul.f32 1.442695, %v281_v49 }
 0x379   :  { %388 = vpow2.f32 %v282_v50 }
 0x386   :  { %v389_v51 = vpop.eup %388 }
 0x387   :  { %284 = vadd.xlane.f32.xlu1 %v389_v51 }
 0x410   :  { %v285_v52 = vpop.xlane.xlu1 %284 }
 0x411   :  { %390 = vrcp.f32 %v285_v52 }
 0x41e   :  { %v391_v53 = vpop.eup %390 }
 0x41f   :  { %v287_v54 = vmul.f32 %v391_v53, %v389_v51 }
 0x421   :  { %288 = vst [vmem:[#allocation8] sm:$0xff] %v287_v54 }
 0x422   :  { %463 = shalt.err (!%p460_p5)
}
 0x423   :  { %298 = dma.vmem_to_hbm [thread:$0]  %s296_s6, 128, %s579_s7, [#allocation4]  }
 0x424   :  { %476 = dma.done.wait [#allocation4], 128  }
 0x425   :  { %477 = vsyncadd [#allocation4], 4294967168 }
 0x426   :  { %302 = vsyncpa [#allocation3], 1 }
 0x427   :  { %303 = vsyncpa [#allocation6], 1 }
 0x428   :  { %304 = vsyncpa [#allocation4], 1 }

</bundles_post_ra>
